<compile_context>
chip_gen: v6e
topology: v6e:2x2x1
jax: 0.10.0
libtpu: 0.0.40
codegen_flags: <defaults>
</compile_context>

<pallas_src>
import functools

import jax
import jax.numpy as jnp
from jax import lax
from jax.experimental import pallas as pl
from jax.experimental.pallas import tpu as pltpu


def _sep_conv_kernel(x_ref, w_ref, b_ref, o_ref, *, H, Wp, KH, KW, Bt,
                     negative_slope):
    # x_ref: (Bt, Cin, L)          flat halo-padded images (+ small flat guard)
    # w_ref: (KH*KW, Cout, Cin)    per-tap folded (BN-scale * pointwise * tap)
    # b_ref: (Cout, 1)             folded BN bias
    # o_ref: (Bt, Cout, H*Wp)      lane-dense, padded-width output slab
    n = H * Wp
    for b in range(Bt):
        x = x_ref[b]                                            # (Cin, L) f32
        # First tap initializes the accumulator (no zeros + add pass).
        acc = jnp.dot(w_ref[0], x[:, 0:n],
                      preferred_element_type=jnp.float32)       # (Cout, n)
        for k in range(1, KH * KW):
            s = (k // KW) * Wp + (k % KW)                       # static offset
            acc = acc + jnp.dot(w_ref[k], x[:, s:s + n],
                                preferred_element_type=jnp.float32)
        y = acc + b_ref[...]                                    # BN bias
        y = jnp.where(y >= 0, y, negative_slope * y)            # LeakyReLU
        o_ref[b] = y.astype(o_ref.dtype)


@functools.partial(jax.jit, static_argnames=("eps", "negative_slope"))
def separable_conv_block(x, dw_weight, pw_weight, bn_gamma, bn_beta,
                         bn_mean, bn_var, eps=1e-5, negative_slope=0.2):
    """SeparableConvBlock forward.  x is NCHW; weights in PyTorch layouts."""
    B, Cin, H, W = x.shape
    Cout = pw_weight.shape[0]
    KH, KW = dw_weight.shape[2], dw_weight.shape[3]
    ph, pw_pad = KH // 2, KW // 2
    Hp, Wp = H + 2 * ph, W + 2 * pw_pad
    HWp = H * Wp
    L = Hp * Wp + 2 * pw_pad            # flat padded image + guard zeros

    # Keep NCHW (no transpose).  Halo pad, flatten the padded image, then add a
    # tiny flat guard of pw_pad zeros on each end so every tap shift kh*Wp+kw is
    # a non-negative static lane offset.
    xf = x.astype(jnp.float32)
    x_pad = jnp.pad(xf, ((0, 0), (0, 0), (ph, ph), (pw_pad, pw_pad)))
    x_flat = jnp.pad(x_pad.reshape(B, Cin, Hp * Wp),
                     ((0, 0), (0, 0), (pw_pad, pw_pad)))        # (B, Cin, L)

    # Fold depthwise tap, pointwise weight and BN scale into one (Cout, Cin)
    # matrix per tap; the BN shift becomes a per-channel bias.
    dw = dw_weight.reshape(Cin, KH * KW).astype(jnp.float32)    # (Cin, K)
    pw = pw_weight.reshape(Cout, Cin).astype(jnp.float32)       # (Cout, Cin)
    scale = bn_gamma.astype(jnp.float32) / jnp.sqrt(bn_var.astype(jnp.float32)
                                                    + eps)
    w_all = ((scale[:, None] * pw)[None, :, :]
             * jnp.transpose(dw)[:, None, :]).astype(jnp.float32)  # (K,Cout,Cin)
    bias = (bn_beta.astype(jnp.float32)
            - bn_mean.astype(jnp.float32) * scale).reshape(Cout, 1)

    # Batch-block size: moderate per-step traffic, >=2 grid steps when possible.
    per_img_bytes = 4 * (Cin * L + Cout * HWp)
    bt = 1
    for d in range(1, B + 1):
        if (B % d == 0 and d * per_img_bytes <= (1 << 20)
                and (B // d) >= min(B, 2)):
            bt = d
    grid = (B // bt,)

    kernel = functools.partial(_sep_conv_kernel, H=H, Wp=Wp, KH=KH, KW=KW,
                               Bt=bt, negative_slope=negative_slope)

    flops = 2 * B * KH * KW * Cout * Cin * HWp + 3 * B * Cout * HWp
    bytes_accessed = 4 * (B * Cin * L + B * Cout * HWp
                          + KH * KW * Cout * Cin + Cout)

    out_flat = pl.pallas_call(
        kernel,
        out_shape=jax.ShapeDtypeStruct((B, Cout, HWp), x.dtype),
        grid_spec=pltpu.PrefetchScalarGridSpec(
            num_scalar_prefetch=0,
            grid=grid,
            in_specs=[
                pl.BlockSpec((bt, Cin, L), lambda i: (i, 0, 0)),
                pl.BlockSpec((KH * KW, Cout, Cin), lambda i: (0, 0, 0)),
                pl.BlockSpec((Cout, 1), lambda i: (0, 0)),
            ],
            out_specs=pl.BlockSpec((bt, Cout, HWp), lambda i: (i, 0, 0)),
        ),
        compiler_params=pltpu.CompilerParams(
            dimension_semantics=("parallel",)),
        cost_estimate=pl.CostEstimate(
            flops=flops, transcendentals=0, bytes_accessed=bytes_accessed),
    )(x_flat, w_all, bias)

    # (B, Cout, H*Wp) -> drop the width halo -> NCHW.  Reshape is free; the
    # slice is a contiguous minor-dim copy (no transpose pass).
    out = out_flat.reshape(B, Cout, H, Wp)[:, :, :, pw_pad:pw_pad + W]
    return out.astype(x.dtype)


def _ref_forward(x, dw_weight, pw_weight, gamma, beta, mean, var,
                 eps=1e-5, slope=0.2):
    """Pure-JAX reference for the module forward (eval-mode BN)."""
    Cin = x.shape[1]
    y = lax.conv_general_dilated(
        x, dw_weight, window_strides=(1, 1), padding="SAME",
        dimension_numbers=("NCHW", "OIHW", "NCHW"),
        feature_group_count=Cin, precision=lax.Precision.HIGHEST)
    y = lax.conv_general_dilated(
        y, pw_weight, window_strides=(1, 1), padding="VALID",
        dimension_numbers=("NCHW", "OIHW", "NCHW"),
        precision=lax.Precision.HIGHEST)
    scale = gamma / jnp.sqrt(var + eps)
    bias = beta - mean * scale
    y = y * scale[None, :, None, None] + bias[None, :, None, None]
    return jnp.where(y >= 0, y, slope * y)


if __name__ == "__main__":
    key = jax.random.PRNGKey(0)
    B, Cin, Cout, H, W = 2, 4, 8, 16, 16
    kx, kd, kp, kg, kb, km, kv = jax.random.split(key, 7)

    x = jax.random.normal(kx, (B, Cin, H, W), dtype=jnp.float32)
    dw_weight = jax.random.normal(kd, (Cin, 1, 3, 3), dtype=jnp.float32) * 0.5
    pw_weight = jax.random.normal(kp, (Cout, Cin, 1, 1), dtype=jnp.float32) * 0.5
    bn_gamma = jax.random.uniform(kg, (Cout,), minval=0.5, maxval=1.5,
                                  dtype=jnp.float32)
    bn_beta = jax.random.normal(kb, (Cout,), dtype=jnp.float32) * 0.1
    bn_mean = jax.random.normal(km, (Cout,), dtype=jnp.float32) * 0.1
    bn_var = jax.random.uniform(kv, (Cout,), minval=0.5, maxval=1.5,
                                dtype=jnp.float32)

    out = separable_conv_block(x, dw_weight, pw_weight,
                               bn_gamma, bn_beta, bn_mean, bn_var)
    jax.block_until_ready(out)

    ref = _ref_forward(x, dw_weight, pw_weight,
                       bn_gamma, bn_beta, bn_mean, bn_var)
    assert out.shape == (B, Cout, H, W)
    assert jnp.allclose(out, ref, atol=1e-3, rtol=1e-3), \
        float(jnp.max(jnp.abs(out - ref)))
    print("KERNEL_OK")
</pallas_src>

<mosaic_0001>
module attributes {stable_mosaic.version = 11 : i64} {
  func.func @_sep_conv_kernel(%arg0: i32, %arg1: memref<1x4x326xf32, #tpu.memory_space<vmem>>, %arg2: memref<9x8x4xf32, #tpu.memory_space<vmem>>, %arg3: memref<8x1xf32, #tpu.memory_space<vmem>>, %arg4: memref<1x8x288xf32, #tpu.memory_space<vmem>>) attributes {dimension_semantics = [#tpu.dimension_semantics<parallel>], iteration_bounds = array<i64: 2>, scalar_prefetch = 0 : i64, scratch_operands = 0 : i64, tpu.core_type = #tpu.core_type<tc>, window_params = [{transform_indices = @transform_0, window_bounds = array<i64: 1, 4, 326>}, {pipeline_mode = #tpu.pipeline_mode<synchronous>, transform_indices = @transform_1, window_bounds = array<i64: 9, 8, 4>}, {pipeline_mode = #tpu.pipeline_mode<synchronous>, transform_indices = @transform_2, window_bounds = array<i64: 8, 1>}, {transform_indices = @transform_3, window_bounds = array<i64: 1, 8, 288>}]} {
    %c0 = arith.constant 0 : index
    %c0_0 = arith.constant 0 : index
    %c0_1 = arith.constant 0 : index
    %0 = vector.load %arg1[%c0, %c0_0, %c0_1] : memref<1x4x326xf32, #tpu.memory_space<vmem>>, vector<1x4x326xf32>
    %1 = vector.shape_cast %0 : vector<1x4x326xf32> to vector<4x326xf32>
    %c0_2 = arith.constant 0 : index
    %c0_3 = arith.constant 0 : index
    %c0_4 = arith.constant 0 : index
    %2 = vector.load %arg2[%c0_2, %c0_3, %c0_4] : memref<9x8x4xf32, #tpu.memory_space<vmem>>, vector<1x8x4xf32>
    %3 = vector.shape_cast %2 : vector<1x8x4xf32> to vector<8x4xf32>
    %4 = vector.extract_strided_slice %1 {offsets = [0, 0], sizes = [4, 288], strides = [1, 1]} : vector<4x326xf32> to vector<4x288xf32>
    %cst = arith.constant dense<0.000000e+00> : vector<8x288xf32>
    %5 = tpu.matmul %3, %4, %cst {dimension_numbers = #tpu.dot_dimension_numbers<[1], [0], [0], [1], [0, 0, 1, 1], [], []>} : vector<8x4xf32>, vector<4x288xf32>, vector<8x288xf32> -> vector<8x288xf32>
    %c1 = arith.constant 1 : index
    %c0_5 = arith.constant 0 : index
    %c0_6 = arith.constant 0 : index
    %6 = vector.load %arg2[%c1, %c0_5, %c0_6] : memref<9x8x4xf32, #tpu.memory_space<vmem>>, vector<1x8x4xf32>
    %7 = vector.shape_cast %6 : vector<1x8x4xf32> to vector<8x4xf32>
    %8 = vector.extract_strided_slice %1 {offsets = [0, 1], sizes = [4, 288], strides = [1, 1]} : vector<4x326xf32> to vector<4x288xf32>
    %cst_7 = arith.constant dense<0.000000e+00> : vector<8x288xf32>
    %9 = tpu.matmul %7, %8, %cst_7 {dimension_numbers = #tpu.dot_dimension_numbers<[1], [0], [0], [1], [0, 0, 1, 1], [], []>} : vector<8x4xf32>, vector<4x288xf32>, vector<8x288xf32> -> vector<8x288xf32>
    %10 = arith.addf %5, %9 : vector<8x288xf32>
    %c2 = arith.constant 2 : index
    %c0_8 = arith.constant 0 : index
    %c0_9 = arith.constant 0 : index
    %11 = vector.load %arg2[%c2, %c0_8, %c0_9] : memref<9x8x4xf32, #tpu.memory_space<vmem>>, vector<1x8x4xf32>
    %12 = vector.shape_cast %11 : vector<1x8x4xf32> to vector<8x4xf32>
    %13 = vector.extract_strided_slice %1 {offsets = [0, 2], sizes = [4, 288], strides = [1, 1]} : vector<4x326xf32> to vector<4x288xf32>
    %cst_10 = arith.constant dense<0.000000e+00> : vector<8x288xf32>
    %14 = tpu.matmul %12, %13, %cst_10 {dimension_numbers = #tpu.dot_dimension_numbers<[1], [0], [0], [1], [0, 0, 1, 1], [], []>} : vector<8x4xf32>, vector<4x288xf32>, vector<8x288xf32> -> vector<8x288xf32>
    %15 = arith.addf %10, %14 : vector<8x288xf32>
    %c3 = arith.constant 3 : index
    %c0_11 = arith.constant 0 : index
    %c0_12 = arith.constant 0 : index
    %16 = vector.load %arg2[%c3, %c0_11, %c0_12] : memref<9x8x4xf32, #tpu.memory_space<vmem>>, vector<1x8x4xf32>
    %17 = vector.shape_cast %16 : vector<1x8x4xf32> to vector<8x4xf32>
    %18 = vector.extract_strided_slice %1 {offsets = [0, 18], sizes = [4, 288], strides = [1, 1]} : vector<4x326xf32> to vector<4x288xf32>
    %cst_13 = arith.constant dense<0.000000e+00> : vector<8x288xf32>
    %19 = tpu.matmul %17, %18, %cst_13 {dimension_numbers = #tpu.dot_dimension_numbers<[1], [0], [0], [1], [0, 0, 1, 1], [], []>} : vector<8x4xf32>, vector<4x288xf32>, vector<8x288xf32> -> vector<8x288xf32>
    %20 = arith.addf %15, %19 : vector<8x288xf32>
    %c4 = arith.constant 4 : index
    %c0_14 = arith.constant 0 : index
    %c0_15 = arith.constant 0 : index
    %21 = vector.load %arg2[%c4, %c0_14, %c0_15] : memref<9x8x4xf32, #tpu.memory_space<vmem>>, vector<1x8x4xf32>
    %22 = vector.shape_cast %21 : vector<1x8x4xf32> to vector<8x4xf32>
    %23 = vector.extract_strided_slice %1 {offsets = [0, 19], sizes = [4, 288], strides = [1, 1]} : vector<4x326xf32> to vector<4x288xf32>
    %cst_16 = arith.constant dense<0.000000e+00> : vector<8x288xf32>
    %24 = tpu.matmul %22, %23, %cst_16 {dimension_numbers = #tpu.dot_dimension_numbers<[1], [0], [0], [1], [0, 0, 1, 1], [], []>} : vector<8x4xf32>, vector<4x288xf32>, vector<8x288xf32> -> vector<8x288xf32>
    %25 = arith.addf %20, %24 : vector<8x288xf32>
    %c5 = arith.constant 5 : index
    %c0_17 = arith.constant 0 : index
    %c0_18 = arith.constant 0 : index
    %26 = vector.load %arg2[%c5, %c0_17, %c0_18] : memref<9x8x4xf32, #tpu.memory_space<vmem>>, vector<1x8x4xf32>
    %27 = vector.shape_cast %26 : vector<1x8x4xf32> to vector<8x4xf32>
    %28 = vector.extract_strided_slice %1 {offsets = [0, 20], sizes = [4, 288], strides = [1, 1]} : vector<4x326xf32> to vector<4x288xf32>
    %cst_19 = arith.constant dense<0.000000e+00> : vector<8x288xf32>
    %29 = tpu.matmul %27, %28, %cst_19 {dimension_numbers = #tpu.dot_dimension_numbers<[1], [0], [0], [1], [0, 0, 1, 1], [], []>} : vector<8x4xf32>, vector<4x288xf32>, vector<8x288xf32> -> vector<8x288xf32>
    %30 = arith.addf %25, %29 : vector<8x288xf32>
    %c6 = arith.constant 6 : index
    %c0_20 = arith.constant 0 : index
    %c0_21 = arith.constant 0 : index
    %31 = vector.load %arg2[%c6, %c0_20, %c0_21] : memref<9x8x4xf32, #tpu.memory_space<vmem>>, vector<1x8x4xf32>
    %32 = vector.shape_cast %31 : vector<1x8x4xf32> to vector<8x4xf32>
    %33 = vector.extract_strided_slice %1 {offsets = [0, 36], sizes = [4, 288], strides = [1, 1]} : vector<4x326xf32> to vector<4x288xf32>
    %cst_22 = arith.constant dense<0.000000e+00> : vector<8x288xf32>
    %34 = tpu.matmul %32, %33, %cst_22 {dimension_numbers = #tpu.dot_dimension_numbers<[1], [0], [0], [1], [0, 0, 1, 1], [], []>} : vector<8x4xf32>, vector<4x288xf32>, vector<8x288xf32> -> vector<8x288xf32>
    %35 = arith.addf %30, %34 : vector<8x288xf32>
    %c7 = arith.constant 7 : index
    %c0_23 = arith.constant 0 : index
    %c0_24 = arith.constant 0 : index
    %36 = vector.load %arg2[%c7, %c0_23, %c0_24] : memref<9x8x4xf32, #tpu.memory_space<vmem>>, vector<1x8x4xf32>
    %37 = vector.shape_cast %36 : vector<1x8x4xf32> to vector<8x4xf32>
    %38 = vector.extract_strided_slice %1 {offsets = [0, 37], sizes = [4, 288], strides = [1, 1]} : vector<4x326xf32> to vector<4x288xf32>
    %cst_25 = arith.constant dense<0.000000e+00> : vector<8x288xf32>
    %39 = tpu.matmul %37, %38, %cst_25 {dimension_numbers = #tpu.dot_dimension_numbers<[1], [0], [0], [1], [0, 0, 1, 1], [], []>} : vector<8x4xf32>, vector<4x288xf32>, vector<8x288xf32> -> vector<8x288xf32>
    %40 = arith.addf %35, %39 : vector<8x288xf32>
    %c8 = arith.constant 8 : index
    %c0_26 = arith.constant 0 : index
    %c0_27 = arith.constant 0 : index
    %41 = vector.load %arg2[%c8, %c0_26, %c0_27] : memref<9x8x4xf32, #tpu.memory_space<vmem>>, vector<1x8x4xf32>
    %42 = vector.shape_cast %41 : vector<1x8x4xf32> to vector<8x4xf32>
    %43 = vector.extract_strided_slice %1 {offsets = [0, 38], sizes = [4, 288], strides = [1, 1]} : vector<4x326xf32> to vector<4x288xf32>
    %cst_28 = arith.constant dense<0.000000e+00> : vector<8x288xf32>
    %44 = tpu.matmul %42, %43, %cst_28 {dimension_numbers = #tpu.dot_dimension_numbers<[1], [0], [0], [1], [0, 0, 1, 1], [], []>} : vector<8x4xf32>, vector<4x288xf32>, vector<8x288xf32> -> vector<8x288xf32>
    %45 = arith.addf %40, %44 : vector<8x288xf32>
    %c0_29 = arith.constant 0 : index
    %c0_30 = arith.constant 0 : index
    %46 = vector.load %arg3[%c0_29, %c0_30] : memref<8x1xf32, #tpu.memory_space<vmem>>, vector<8x1xf32>
    %47 = vector.broadcast %46 : vector<8x1xf32> to vector<8x288xf32>
    %48 = arith.addf %45, %47 : vector<8x288xf32>
    %cst_31 = arith.constant 0.000000e+00 : f32
    %49 = vector.broadcast %cst_31 : f32 to vector<8x288xf32>
    %50 = arith.cmpf oge, %48, %49 : vector<8x288xf32>
    %cst_32 = arith.constant 2.000000e-01 : f32
    %51 = vector.broadcast %cst_32 : f32 to vector<8x288xf32>
    %52 = arith.mulf %51, %48 : vector<8x288xf32>
    %53 = arith.select %50, %48, %52 : vector<8x288xi1>, vector<8x288xf32>
    %c0_33 = arith.constant 0 : index
    %c0_34 = arith.constant 0 : index
    %c0_35 = arith.constant 0 : index
    %54 = vector.load %arg4[%c0_33, %c0_34, %c0_35] : memref<1x8x288xf32, #tpu.memory_space<vmem>>, vector<1x8x288xf32>
    %55 = vector.shape_cast %54 : vector<1x8x288xf32> to vector<8x288xf32>
    %56 = vector.shape_cast %53 : vector<8x288xf32> to vector<1x8x288xf32>
    tpu.vector_store %arg4[%c0_33, %c0_34, %c0_35], %56 {strides = array<i32>} : memref<1x8x288xf32, #tpu.memory_space<vmem>>, vector<1x8x288xf32>,
    return
  }
  func.func @transform_0(%arg0: i32) -> (i32, i32, i32) {
    %c0_i32 = arith.constant 0 : i32
    %c0_i32_0 = arith.constant 0 : i32
    %c0_i32_1 = arith.constant 0 : i32
    return %arg0, %c0_i32, %c0_i32_0 : i32, i32, i32
  }
  func.func @transform_1(%arg0: i32) -> (i32, i32, i32) {
    %c0_i32 = arith.constant 0 : i32
    %c0_i32_0 = arith.constant 0 : i32
    %c0_i32_1 = arith.constant 0 : i32
    %c0_i32_2 = arith.constant 0 : i32
    return %c0_i32, %c0_i32_0, %c0_i32_1 : i32, i32, i32
  }
  func.func @transform_2(%arg0: i32) -> (i32, i32) {
    %c0_i32 = arith.constant 0 : i32
    %c0_i32_0 = arith.constant 0 : i32
    %c0_i32_1 = arith.constant 0 : i32
    return %c0_i32, %c0_i32_0 : i32, i32
  }
  func.func @transform_3(%arg0: i32) -> (i32, i32, i32) {
    %c0_i32 = arith.constant 0 : i32
    %c0_i32_0 = arith.constant 0 : i32
    %c0_i32_1 = arith.constant 0 : i32
    return %arg0, %c0_i32, %c0_i32_0 : i32, i32, i32
  }
}

</mosaic_0001>

<bundles_post_ra>
// kernel: separable_conv_block.1
= control target key start
LH: loop header
LB: loop body
LE: loop exit
PB: predicated region body
PF: predicated region fallthrough
CT: control target
= control target key end

     0   :  { %s1902_s12 = smov 0   ;;  %s2053_s0 = inlined_call_operand.vmem [shape: f32[2,4,326], index: 0, kind: input, shape index: {}]   ;;  %s2054_s1 = inlined_call_operand.vmem [shape: f32[9,8,4], index: 1, kind: input, shape index: {}]   ;;  %s2055_s2 = inlined_call_operand.vmem [shape: f32[8,1], index: 2, kind: input, shape index: {}]   ;;  %s2056_s3 = inlined_call_operand.vmem [shape: f32[2,8,288], index: 3, kind: output, shape index: {}]  }
   0x1 LB: > { %s1715_s13 = sadd.s32 4294967295, %s1869_s12   ;;  %p1719_p0 = scmp.ge.s32.totalorder %s1869_s12, 1  ;;  %s1869_s12 = sphi %s1902_s12, %s13_s12  }
   0x2   : > { %p137_p1 = scmp.lt.s32.totalorder %s1869_s12, 3 }
   0x4   : > { %p138_p2 = pnand %p1719_p0, %p137_p1 }
   0x5   : > { %p161_p3 = scmp.lt.s32.totalorder (!%p138_p2), %s1715_s13, 1  ;;  %s1873_s18 = smov (!%p138_p2), 127  }
   0x6   : > { %141 = sbr.rel (%p138_p2) target bundleno = 381 (0x17d), region = 32  ;;  %s1874_s19 = smov (!%p138_p2), 126  }
   0x7   : > { %s1875_s20 = smov (!%p138_p2), 110   ;;  %s1876_s21 = smov (!%p138_p2), 109  }
   0x8   : > { %s1877_s22 = smov (!%p138_p2), 108   ;;  %s1878_s23 = smov (!%p138_p2), 92  }
   0x9   : > { %s1880_s24 = smov (!%p138_p2), 91   ;;  %s1881_s25 = smov (!%p138_p2), 90  }
   0xb   : > { %v1871_v0 = vmov 0.0   ;;  %vm1872_vm0 = vmmov 0   ;;  %s2058_s13 = smov (!%p161_p3, %s1715_s13), 1  ;;  %v1879_v4 = vmov 0   ;;  %v1638_v5 = vld [vmem:[%s2055_s2] sm:$0xff]  ;;  %vm192_vm1 = vcmask 1043456  }
   0xc   : > { %1795 = vmatprep.subr.mxu1 %v1871_v0  ;;  %1797 = vmatprep.mubr.msk.f32.mxu1 %vm1872_vm0, %v1871_v0  ;;  %s1840_s14 = smul.u32 12, %s2058_s13  ;;  %v1722_v6 = vld [vmem:[%s2054_s1 + $0x8] sm:$0xff]  ;;  %vm188_vm2 = vcmask 31744   ;;  %v173_v9 = vld [vmem:[%s2054_s1] sm:$0xff]  ;;  %vm185_vm3 = vcmask 1039360   ;;  %v1733_v12 = vld [vmem:[%s2054_s1 + $0x10] sm:$0xff] }
   0xd   : > { %263 = vmatprep.mubr.f32.mxu0 %v1871_v0  ;;  %1861 = vset.pattern.permute.xlu0 %v1879_v4  ;;  %vm498_vm4 = vcmask 1031168   ;;  %v1739_v19 = vld [vmem:[%s2054_s1 + $0x18] sm:$0xff]  ;;  %vm662_vm5 = vcmask 900096   ;;  %vm826_vm6 = vcmask 891904   ;;  %v1745_v28 = vld [vmem:[%s2054_s1 + $0x20] sm:$0xff]  ;;  %vm990_vm7 = vcmask 883712  }
   0xe   : > { %s165_s17 = scalar_lea.vmem %s2053_s0, %s1840_s14  ;;  %v1751_v33 = vld [vmem:[%s2054_s1 + $0x28] sm:$0xff]  ;;  %vm1154_vm8 = vcmask 752640   ;;  %v1757_v38 = vld [vmem:[%s2054_s1 + $0x30] sm:$0xff]  ;;  %vm1318_vm9 = vcmask 744448   ;;  %v1763_v43 = vld [vmem:[%s2054_s1 + $0x38] sm:$0xff]  ;;  %vm1482_vm10 = vcmask 736256  }
   0xf   : > { %v172_v1 = vld [vmem:[%s165_s17 + $0x8] sm:$0xf]  ;;  %v1920_v2 = vld [vmem:[%s165_s17] sm:$0xff]  ;;  %vm1658_vm11 = vcmask 261120  }
  0x10   : > { %183 = vrot.lane.b32.xlu0 %v172_v1, %s1873_s18  ;;  %179 = vrot.lane.b32.xlu1 %v1920_v2, %s1873_s18  ;;  %v178_v3 = vcombine.high %v1920_v2, %v1920_v2  ;;  %v1769_v50 = vld [vmem:[%s2054_s1 + $0x40] sm:$0xff] }
  0x14   : > { %496 = vrot.lane.b32.xlu0 %v172_v1, %s1874_s19  ;;  %492 = vrot.lane.b32.xlu1 %v1920_v2, %s1874_s19 }
  0x18   : > { %494 = vrot.lane.b32.xlu1 %v178_v3, %s1874_s19  ;;  %181 = vrot.lane.b32.xlu0 %v178_v3, %s1873_s18 }
  0x1c   : > { %660 = vrot.lane.b32.xlu1 %v172_v1, %s1875_s20  ;;  %658 = vrot.lane.b32.xlu0 %v178_v3, %s1875_s20 }
  0x20   : > { %822 = vrot.lane.b32.xlu1 %v178_v3, %s1876_s21  ;;  %656 = vrot.lane.b32.xlu0 %v1920_v2, %s1875_s20 }
  0x24   : > { %820 = vrot.lane.b32.xlu1 %v1920_v2, %s1876_s21  ;;  %824 = vrot.lane.b32.xlu0 %v172_v1, %s1876_s21  ;;  %s1841_s21 = smul.u32 24, %s2058_s13 }
  0x28   : > { %988 = vrot.lane.b32.xlu1 %v172_v1, %s1877_s22  ;;  %986 = vrot.lane.b32.xlu0 %v178_v3, %s1877_s22 }
  0x2c   : > { %1150 = vrot.lane.b32.xlu1 %v178_v3, %s1878_s23  ;;  %984 = vrot.lane.b32.xlu0 %v1920_v2, %s1877_s22 }
  0x30   : > { %1148 = vrot.lane.b32.xlu1 %v1920_v2, %s1878_s23  ;;  %1152 = vrot.lane.b32.xlu0 %v172_v1, %s1878_s23 }
  0x34   : > { %1316 = vrot.lane.b32.xlu1 %v172_v1, %s1880_s24  ;;  %1314 = vrot.lane.b32.xlu0 %v178_v3, %s1880_s24 }
  0x38   : > { %1478 = vrot.lane.b32.xlu1 %v178_v3, %s1881_s25  ;;  %1312 = vrot.lane.b32.xlu0 %v1920_v2, %s1880_s24  ;;  %s170_s24 = scalar_lea.vmem %s2056_s3, %s1841_s21 }
  0x3c   : > { %1476 = vrot.lane.b32.xlu1 %v1920_v2, %s1881_s25  ;;  %1480 = vrot.lane.b32.xlu0 %v172_v1, %s1881_s25 }
  0x40   : > { %1641 = vperm.xlu0 %1861, %v1638_v5  }
  0x82   : > { %v184_v7 = vpop.permute.xlu0 %183  ;;  %v180_v8 = vpop.permute.xlu1 %179 }
  0x83   : > { %1796 = vmatpush3.msk.msra.mxu1 %vm192_vm1, %v184_v7 }
  0x84   : > { %1798 = vmatmul.mubr.msk.f32.vlgmr.msra.gmra.mxu1 %vm188_vm2, %v1722_v6  ;;  %1800 = vmatprep.subr.mxu1 %v1871_v0 }
  0x85   : > { %1801 = vmatpush3.msk.msra.mxu1 %vm192_vm1, %v172_v1  ;;  %1802 = vmatprep.mubr.msk.f32.mxu1 %vm1872_vm0, %v1871_v0 }
  0x86   : > { %v497_v10 = vpop.permute.xlu0 %496  ;;  %v493_v11 = vpop.permute.xlu1 %492  ;;  %1805 = vmatprep.subr.mxu1 %v1871_v0 }
  0x88   : > { %1803 = vmatmul.mubr.msk.f32.vlgmr.msra.gmra.mxu1 %vm188_vm2, %v173_v9 }
  0x89   : > { %1806 = vmatpush3.msk.msra.mxu1 %vm192_vm1, %v497_v10  ;;  %1807 = vmatprep.mubr.msk.f32.mxu1 %vm1872_vm0, %v1871_v0 }
  0x8a   : > { %v495_v13 = vpop.permute.xlu1 %494  ;;  %v182_v14 = vpop.permute.xlu0 %181  ;;  %1810 = vmatprep.subr.mxu1 %v1871_v0 }
  0x8b   : > { %v187_v15 = vsel %vm185_vm3, %v182_v14, %v184_v7  ;;  %v186_v16 = vsel %vm185_vm3, %v180_v8, %v182_v14  ;;  %v500_v20 = vsel %vm498_vm4, %v495_v13, %v497_v10  ;;  %v499_v21 = vsel %vm498_vm4, %v493_v11, %v495_v13 }
  0x8c   : > { %1723 = vmatprep.subr.msk.mxu0 %vm192_vm1, %v187_v15  ;;  %1808 = vmatmul.mubr.msk.f32.vlgmr.msra.gmra.mxu1 %vm188_vm2, %v1733_v12 }
  0x8d   : > { %1724 = vmatpush1.msk.msra.mxu0 %vm192_vm1, %v186_v16  ;;  %1812 = vmatprep.mubr.msk.f32.mxu1 %vm1872_vm0, %v1871_v0 }
  0x8e   : > { %v661_v17 = vpop.permute.xlu1 %660  ;;  %1725 = vmatmul.mubr.msk.f32.vlgmr.msra.gmra.mxu0 %vm188_vm2, %v1722_v6  ;;  %1728 = vmatprep.subr.msk.mxu0 %vm192_vm1, %v178_v3  ;;  %v659_v18 = vpop.permute.xlu0 %658 }
  0x8f   : > { %1729 = vmatpush1.msk.msra.mxu0 %vm192_vm1, %v1920_v2  ;;  %1811 = vmatpush3.msk.msra.mxu1 %vm192_vm1, %v661_v17  ;;  %v664_v24 = vsel %vm662_vm5, %v659_v18, %v661_v17 }
  0x90   : > { %1734 = vmatprep.subr.msk.mxu0 %vm192_vm1, %v500_v20  ;;  %413 = vmatprep.mubr.f32.mxu0 %v1871_v0 }
  0x91   : > { %1815 = vmatprep.subr.mxu1 %v1871_v0  ;;  %1813 = vmatmul.mubr.msk.f32.vlgmr.msra.gmra.mxu1 %vm188_vm2, %v1739_v19 }
  0x92   : > { %v823_v22 = vpop.permute.xlu1 %822  ;;  %1730 = vmatmul.mubr.msk.f32.vlgmr.msra.gmra.mxu0 %vm188_vm2, %v173_v9  ;;  %v657_v23 = vpop.permute.xlu0 %656  ;;  %1817 = vmatprep.mubr.msk.f32.mxu1 %vm1872_vm0, %v1871_v0 }
  0x93   : > { %1735 = vmatpush1.msk.msra.mxu0 %vm192_vm1, %v499_v21  ;;  %574 = vmatprep.mubr.f32.mxu0 %v1871_v0  ;;  %v663_v25 = vsel %vm662_vm5, %v657_v23, %v659_v18 }
  0x94   : > { %1740 = vmatprep.subr.msk.mxu0 %vm192_vm1, %v664_v24 }
  0x96   : > { %v821_v26 = vpop.permute.xlu1 %820  ;;  %1736 = vmatmul.mubr.msk.f32.vlgmr.msra.gmra.mxu0 %vm188_vm2, %v1733_v12  ;;  %v825_v27 = vpop.permute.xlu0 %824 }
  0x97   : > { %1741 = vmatpush1.msk.msra.mxu0 %vm192_vm1, %v663_v25  ;;  %v828_v29 = vsel %vm826_vm6, %v823_v22, %v825_v27  ;;  %1816 = vmatpush3.msk.msra.mxu1 %vm192_vm1, %v825_v27  ;;  %v827_v30 = vsel %vm826_vm6, %v821_v26, %v823_v22 }
  0x98   : > { %1746 = vmatprep.subr.msk.mxu0 %vm192_vm1, %v828_v29  ;;  %738 = vmatprep.mubr.f32.mxu0 %v1871_v0 }
  0x99   : > { %1818 = vmatmul.mubr.msk.f32.vlgmr.msra.gmra.mxu1 %vm188_vm2, %v1745_v28  ;;  %1820 = vmatprep.subr.mxu1 %v1871_v0 }
  0x9a   : > { %v989_v31 = vpop.permute.xlu1 %988  ;;  %1742 = vmatmul.mubr.msk.f32.vlgmr.msra.gmra.mxu0 %vm188_vm2, %v1739_v19  ;;  %v987_v32 = vpop.permute.xlu0 %986  ;;  %1822 = vmatprep.mubr.msk.f32.mxu1 %vm1872_vm0, %v1871_v0 }
  0x9b   : > { %1747 = vmatpush1.msk.msra.mxu0 %vm192_vm1, %v827_v30  ;;  %v992_v34 = vsel %vm990_vm7, %v987_v32, %v989_v31  ;;  %1821 = vmatpush3.msk.msra.mxu1 %vm192_vm1, %v989_v31 }
  0x9c   : > { %1752 = vmatprep.subr.msk.mxu0 %vm192_vm1, %v992_v34  ;;  %902 = vmatprep.mubr.f32.mxu0 %v1871_v0 }
  0x9d   : > { %1823 = vmatmul.mubr.msk.f32.vlgmr.msra.gmra.mxu1 %vm188_vm2, %v1751_v33  ;;  %1825 = vmatprep.subr.mxu1 %v1871_v0 }
  0x9e   : > { %v1151_v35 = vpop.permute.xlu1 %1150  ;;  %1748 = vmatmul.mubr.msk.f32.vlgmr.msra.gmra.mxu0 %vm188_vm2, %v1745_v28  ;;  %v985_v36 = vpop.permute.xlu0 %984  ;;  %1827 = vmatprep.mubr.msk.f32.mxu1 %vm1872_vm0, %v1871_v0 }
  0x9f   : > { %v991_v37 = vsel %vm990_vm7, %v985_v36, %v987_v32  ;;  %1066 = vmatprep.mubr.f32.mxu0 %v1871_v0 }
  0xa0   : > { %1753 = vmatpush1.msk.msra.mxu0 %vm192_vm1, %v991_v37 }
  0xa2   : > { %v1149_v39 = vpop.permute.xlu1 %1148  ;;  %1754 = vmatmul.mubr.msk.f32.vlgmr.msra.gmra.mxu0 %vm188_vm2, %v1751_v33  ;;  %v1153_v40 = vpop.permute.xlu0 %1152 }
  0xa3   : > { %v1155_v41 = vsel %vm1154_vm8, %v1149_v39, %v1151_v35  ;;  %v1156_v42 = vsel %vm1154_vm8, %v1151_v35, %v1153_v40  ;;  %1826 = vmatpush3.msk.msra.mxu1 %vm192_vm1, %v1153_v40  ;;  %1230 = vmatprep.mubr.f32.mxu0 %v1871_v0 }
  0xa4   : > { %1758 = vmatprep.subr.msk.mxu0 %vm192_vm1, %v1156_v42  ;;  %1828 = vmatmul.mubr.msk.f32.vlgmr.msra.gmra.mxu1 %vm188_vm2, %v1757_v38 }
  0xa5   : > { %1759 = vmatpush1.msk.msra.mxu0 %vm192_vm1, %v1155_v41  ;;  %1830 = vmatprep.subr.mxu1 %v1871_v0 }
  0xa6   : > { %v1317_v44 = vpop.permute.xlu1 %1316  ;;  %1760 = vmatmul.mubr.msk.f32.vlgmr.msra.gmra.mxu0 %vm188_vm2, %v1757_v38  ;;  %v1315_v45 = vpop.permute.xlu0 %1314  ;;  %1832 = vmatprep.mubr.msk.f32.mxu1 %vm1872_vm0, %v1871_v0 }
  0xa7   : > { %v1320_v46 = vsel %vm1318_vm9, %v1315_v45, %v1317_v44  ;;  %1831 = vmatpush3.msk.msra.mxu1 %vm192_vm1, %v1317_v44  ;;  %1394 = vmatprep.mubr.f32.mxu0 %v1871_v0 }
  0xa8   : > { %1764 = vmatprep.subr.msk.mxu0 %vm192_vm1, %v1320_v46  ;;  %1833 = vmatmul.mubr.msk.f32.vlgmr.msra.gmra.mxu1 %vm188_vm2, %v1763_v43 }
  0xa9   : > { %1835 = vmatprep.subr.mxu1 %v1871_v0  ;;  %1837 = vmatprep.mubr.msk.f32.mxu1 %vm1872_vm0, %v1871_v0 }
  0xaa   : > { %v1479_v47 = vpop.permute.xlu1 %1478  ;;  %v1313_v48 = vpop.permute.xlu0 %1312 }
  0xab   : > { %v1319_v49 = vsel %vm1318_vm9, %v1313_v48, %v1315_v45 }
  0xac   : > { %1765 = vmatpush1.msk.msra.mxu0 %vm192_vm1, %v1319_v49 }
  0xad   : > { %1766 = vmatmul.mubr.msk.f32.vlgmr.msra.gmra.mxu0 %vm188_vm2, %v1763_v43 }
  0xae   : > { %v1477_v51 = vpop.permute.xlu1 %1476  ;;  %v1481_v52 = vpop.permute.xlu0 %1480  ;;  %1558 = vmatprep.mubr.f32.mxu0 %v1871_v0 }
  0xaf   : > { %v1483_v53 = vsel %vm1482_vm10, %v1477_v51, %v1479_v47  ;;  %v1484_v54 = vsel %vm1482_vm10, %v1479_v47, %v1481_v52  ;;  %1836 = vmatpush3.msk.msra.mxu1 %vm192_vm1, %v1481_v52 }
  0xb0   : > { %1770 = vmatprep.subr.msk.mxu0 %vm192_vm1, %v1484_v54  ;;  %1838 = vmatmul.mubr.msk.f32.vlgmr.msra.gmra.mxu1 %vm188_vm2, %v1769_v50 }
  0xb1   : > { %1771 = vmatpush1.msk.msra.mxu0 %vm192_vm1, %v1483_v53 }
  0xb2   : > { %1772 = vmatmul.mubr.msk.f32.vlgmr.msra.gmra.mxu0 %vm188_vm2, %v1769_v50 }
  0xbb   : > { %v1642_v42 = vpop.permute.xlu0 %1641 }
 0x144   : > { %v336_v55 = vpop.f32.mrf.mxu1 }
 0x146   : > { %v1799_v56 = vpop.f32.mrf.mxu1 }
 0x148   : > { %v486_v57 = vpop.f32.mrf.mxu1 }
 0x149   : > { %v487_v7 = vadd.f32 %v486_v57, %v336_v55 }
 0x14a   : > { %v1804_v58 = vpop.f32.mrf.mxu1 }
 0x14c   : > { %v647_v59 = vpop.f32.mrf.mxu1 }
 0x14d   : > { %v653_v12 = vadd.f32 %v647_v59, %v487_v7 }
 0x14e   : > { %v265_v60 = vpop.f32.mrf.mxu0  ;;  %v1809_v61 = vpop.f32.mrf.mxu1 }
 0x150   : > { %v267_v62 = vpop.f32.mrf.mxu0 }
 0x151   : > { %v811_v63 = vpop.f32.mrf.mxu1 }
 0x152   : > { %v415_v0 = vpop.f32.mrf.mxu0  ;;  %v817_v16 = vadd.f32 %v811_v63, %v653_v12 }
 0x153   : > { %v1814_v1 = vpop.f32.mrf.mxu1  ;;  %v416_v19 = vadd.f32 %v415_v0, %v265_v60 }
 0x154   : > { %v417_v2 = vpop.f32.mrf.mxu0 }
 0x155   : > { %v418_v21 = vadd.f32 %v417_v2, %v267_v62 }
 0x156   : > { %v576_v3 = vpop.f32.mrf.mxu0 }
 0x157   : > { %v651_v22 = vadd.f32 %v576_v3, %v416_v19 }
 0x158   : > { %v578_v4 = vpop.f32.mrf.mxu0 }
 0x159   : > { %v975_v5 = vpop.f32.mrf.mxu1  ;;  %v652_v26 = vadd.f32 %v578_v4, %v418_v21 }
 0x15a   : > { %v740_v6 = vpop.f32.mrf.mxu0  ;;  %v981_v23 = vadd.f32 %v975_v5, %v817_v16 }
 0x15b   : > { %v1819_v8 = vpop.f32.mrf.mxu1  ;;  %v815_v27 = vadd.f32 %v740_v6, %v651_v22 }
 0x15c   : > { %v742_v9 = vpop.f32.mrf.mxu0 }
 0x15d   : > { %v1139_v10 = vpop.f32.mrf.mxu1  ;;  %v816_v29 = vadd.f32 %v742_v9, %v652_v26 }
 0x15e   : > { %v904_v11 = vpop.f32.mrf.mxu0  ;;  %v1145_v31 = vadd.f32 %v1139_v10, %v981_v23 }
 0x15f   : > { %v1824_v13 = vpop.f32.mrf.mxu1  ;;  %v979_v30 = vadd.f32 %v904_v11, %v815_v27 }
 0x160   : > { %v906_v14 = vpop.f32.mrf.mxu0 }
 0x161   : > { %v980_v33 = vadd.f32 %v906_v14, %v816_v29 }
 0x162   : > { %v1068_v15 = vpop.f32.mrf.mxu0 }
 0x163   : > { %v1143_v34 = vadd.f32 %v1068_v15, %v979_v30 }
 0x164   : > { %v1070_v17 = vpop.f32.mrf.mxu0  ;;  %v1303_v18 = vpop.f32.mrf.mxu1 }
 0x165   : > { %v1309_v35 = vadd.f32 %v1303_v18, %v1145_v31  ;;  %v1144_v37 = vadd.f32 %v1070_v17, %v980_v33 }
 0x166   : > { %v1829_v20 = vpop.f32.mrf.mxu1  ;;  %v1232_v24 = vpop.f32.mrf.mxu0 }
 0x167   : > { %v1307_v38 = vadd.f32 %v1232_v24, %v1143_v34 }
 0x168   : > { %v1467_v25 = vpop.f32.mrf.mxu1  ;;  %v1234_v32 = vpop.f32.mrf.mxu0 }
 0x169   : > { %v1473_v39 = vadd.f32 %v1467_v25, %v1309_v35  ;;  %v1308_v43 = vadd.f32 %v1234_v32, %v1144_v37 }
 0x16a   : > { %v1834_v28 = vpop.f32.mrf.mxu1 }
 0x16d   : > { %v1396_v36 = vpop.f32.mrf.mxu0 }
 0x16e   : > { %v1471_v44 = vadd.f32 %v1396_v36, %v1307_v38 }
 0x16f   : > { %v1398_v40 = vpop.f32.mrf.mxu0 }
 0x170   : > { %v1631_v41 = vpop.f32.mrf.mxu1  ;;  %v1472_v48 = vadd.f32 %v1398_v40, %v1308_v43 }
 0x171   : > { %v1637_v45 = vadd.f32 %v1631_v41, %v1473_v39 }
 0x172   : > { %v1560_v46 = vpop.f32.mrf.mxu0  ;;  %v1839_v47 = vpop.f32.mrf.mxu1 }
 0x173   : > { %v1635_v49 = vadd.f32 %v1560_v46, %v1471_v44  ;;  %v1646_v50 = vadd.f32 %v1642_v42, %v1637_v45 }
 0x174   : > { %v1562_v51 = vpop.f32.mrf.mxu0 }
 0x175   : > { %v1644_v52 = vadd.f32 %v1642_v42, %v1635_v49  ;;  %vm1649_vm12 = vcmp.ge.f32.partialorder %v1646_v50, 0.0  ;;  %v1652_v53 = vmul.f32 0.2, %v1646_v50  ;;  %v1636_v54 = vadd.f32 %v1562_v51, %v1472_v48 }
 0x177   : > { %vm1647_vm13 = vcmp.ge.f32.partialorder %v1644_v52, 0.0  ;;  %v1650_v55 = vmul.f32 0.2, %v1644_v52  ;;  %v1655_v56 = vsel %vm1649_vm12, %v1646_v50, %v1652_v53  ;;  %v1645_v57 = vadd.f32 %v1642_v42, %v1636_v54 }
 0x178   : > { %1659 = vst.msk [vmem:[%s170_s24 + $0x10] sm:$0xff] %vm1658_vm11, %v1655_v56 }
 0x179   : > { %v1653_v58 = vsel %vm1647_vm13, %v1644_v52, %v1650_v55  ;;  %vm1648_vm14 = vcmp.ge.f32.partialorder %v1645_v57, 0.0  ;;  %v1651_v59 = vmul.f32 0.2, %v1645_v57 }
 0x17a   : > { %1656 = vst [vmem:[%s170_s24] sm:$0xff] %v1653_v58 }
 0x17b   : > { %v1654_v60 = vsel %vm1648_vm14, %v1645_v57, %v1651_v59 }
 0x17c   : > { %1657 = vst [vmem:[%s170_s24 + $0x8] sm:$0xff] %v1654_v60 }
 0x17d PF: > { %s13_s12 = sadd.s32 1, %s1869_s12  }
 0x17e   : > { %p10_p4 = scmp.ge.s32.totalorder %s13_s12, 4  }
 0x180   :  { %12 = sbr.rel (!%p10_p4) target bundleno = 1 (0x1), region = 70 }

</bundles_post_ra>
